<compile_context>
chip_gen: v6e
topology: v6e:2x2x1
jax: 0.10.0
libtpu: 0.0.40
codegen_flags: <defaults>
</compile_context>

<pallas_src>
import jax
import jax.numpy as jnp
from jax.experimental import pallas as pl
from jax.experimental.pallas import tpu as pltpu

NDIMS = 3   # input / reconstruction width
H1 = 128    # fc1 / fc3 hidden width
Z = 16      # latent width


def _round_up(n, m):
    return ((n + m - 1) // m) * m


def _vae_kernel(x_ref, w1_ref, b1_ref, w2_ref, b2_ref, w3_ref, b3_ref,
                w4_ref, b4_ref, eps_ref, recon_ref, mulv_ref):
    x = x_ref[...]                                   # (tb, 3)  f32
    w1 = w1_ref[...]                                 # (3, 128) f32

    # --- encode: h1 = relu(x @ W1 + b1), K=3 contraction done on the VPU ---
    h1 = (x[:, 0:1] * w1[0:1, :]
          + x[:, 1:2] * w1[1:2, :]
          + x[:, 2:3] * w1[2:3, :]
          + b1_ref[...])
    h1 = jnp.maximum(h1, 0.0)                        # (tb, 128) f32

    mxu_dtype = w2_ref.dtype

    # --- fused mu/logvar head: single (128, 32) matmul, split columns ---
    mulv = jnp.dot(h1.astype(mxu_dtype), w2_ref[...],
                   preferred_element_type=jnp.float32) + b2_ref[...]
    mu = mulv[:, :Z]
    logvar = mulv[:, Z:]

    # --- reparameterize: z = mu + eps * exp(0.5 * logvar) (f32 VPU/EUP) ---
    std = jnp.exp(0.5 * logvar)
    z = mu + eps_ref[...] * std                      # (tb, 16) f32

    # --- decode: sigmoid(relu(z @ W3 + b3) @ W4 + b4) ---
    h3 = jnp.dot(z.astype(mxu_dtype), w3_ref[...],
                 preferred_element_type=jnp.float32) + b3_ref[...]
    h3 = jnp.maximum(h3, 0.0)
    logits = jnp.dot(h3.astype(mxu_dtype), w4_ref[...],
                     preferred_element_type=jnp.float32) + b4_ref[...]

    recon_ref[...] = jax.nn.sigmoid(logits)          # (tb, 3)
    mulv_ref[...] = mulv                             # (tb, 32) = [mu | logvar]


def vae_forward(x, params, eps, *, tile_b=None, mxu_dtype=jnp.bfloat16):
    """x: (..., NDIMS) float32, eps: (..., Z) float32.

    Returns (recon, mu, logvar), matching VAE.forward (eps supplied externally
    for determinism).  mxu_dtype controls the operand dtype of the MXU matmuls
    (bf16 by default; accumulation is always f32).
    """
    x2d = x.reshape(-1, NDIMS)              # x.view(-1, ndims)
    eps2d = eps.reshape(-1, Z)
    B = x2d.shape[0]

    # --- batch tile selection + padding (no hard divisibility assert) ---
    if tile_b is None:
        tile_b = min(_round_up(B, 8), 512)
    tile_b = max(8, _round_up(tile_b, 8))
    B_pad = _round_up(B, tile_b)
    if B_pad != B:
        x2d = jnp.pad(x2d, ((0, B_pad - B), (0, 0)))
        eps2d = jnp.pad(eps2d, ((0, B_pad - B), (0, 0)))

    (w1, b1, w21, b21, w22, b22, w3, b3, w4, b4) = params

    # Fuse the two encoder heads into one weight/bias; cast MXU weights.
    w2 = jnp.concatenate([w21, w22], axis=1).astype(mxu_dtype)   # (128, 32)
    b2 = jnp.concatenate([b21, b22], axis=1)                     # (1, 32) f32
    w1 = w1.astype(jnp.float32)                                  # VPU path stays f32
    w3c = w3.astype(mxu_dtype)
    w4c = w4.astype(mxu_dtype)

    grid = (B_pad // tile_b,)

    def rep(i):                 # replicated weight / bias block
        return (0, 0)

    def batch_blk(i):           # batch-tiled block
        return (i, 0)

    in_specs = [
        pl.BlockSpec((tile_b, NDIMS), batch_blk),    # x
        pl.BlockSpec((NDIMS, H1), rep),              # w1  (f32, VPU)
        pl.BlockSpec((1, H1), rep),                  # b1
        pl.BlockSpec((H1, 2 * Z), rep),              # w2 = [w21 | w22]
        pl.BlockSpec((1, 2 * Z), rep),               # b2 = [b21 | b22]
        pl.BlockSpec((Z, H1), rep),                  # w3
        pl.BlockSpec((1, H1), rep),                  # b3
        pl.BlockSpec((H1, NDIMS), rep),              # w4
        pl.BlockSpec((1, NDIMS), rep),               # b4
        pl.BlockSpec((tile_b, Z), batch_blk),        # eps
    ]
    out_specs = (
        pl.BlockSpec((tile_b, NDIMS), batch_blk),    # recon
        pl.BlockSpec((tile_b, 2 * Z), batch_blk),    # [mu | logvar]
    )
    out_shape = (
        jax.ShapeDtypeStruct((B_pad, NDIMS), jnp.float32),
        jax.ShapeDtypeStruct((B_pad, 2 * Z), jnp.float32),
    )

    inputs = (x2d, w1, b1, w2, b2, w3c, b3, w4c, b4, eps2d)

    # Advisory cost estimate for XLA's scheduler.
    flops = 2 * B_pad * (NDIMS * H1 + H1 * 2 * Z + Z * H1 + H1 * NDIMS)
    transcendentals = B_pad * (Z + NDIMS)            # exp for std, sigmoid
    bytes_accessed = int(
        sum(a.size * a.dtype.itemsize for a in inputs)
        + B_pad * (NDIMS + 2 * Z) * 4)
    cost = pl.CostEstimate(flops=flops,
                           transcendentals=transcendentals,
                           bytes_accessed=bytes_accessed)

    recon, mulv = pl.pallas_call(
        _vae_kernel,
        grid=grid,
        in_specs=in_specs,
        out_specs=out_specs,
        out_shape=out_shape,
        cost_estimate=cost,
        compiler_params=pltpu.CompilerParams(
            dimension_semantics=("parallel",)),
    )(*inputs)

    recon = recon[:B]
    mu = mulv[:B, :Z]
    logvar = mulv[:B, Z:]
    return recon, mu, logvar


def init_params(key):
    """Deterministic synthetic init matching nn.Linear shapes (stored transposed)."""
    ks = jax.random.split(key, 10)

    def linear(kw, kb, fan_in, fan_out):
        # PyTorch default: U(-1/sqrt(fan_in), 1/sqrt(fan_in)); weights stored (in, out)
        bound = 1.0 / jnp.sqrt(fan_in)
        w = jax.random.uniform(kw, (fan_in, fan_out), jnp.float32, -bound, bound)
        b = jax.random.uniform(kb, (1, fan_out), jnp.float32, -bound, bound)
        return w, b

    w1, b1 = linear(ks[0], ks[1], NDIMS, H1)     # fc1
    w21, b21 = linear(ks[2], ks[3], H1, Z)       # fc21
    w22, b22 = linear(ks[4], ks[5], H1, Z)       # fc22
    w3, b3 = linear(ks[6], ks[7], Z, H1)         # fc3
    w4, b4 = linear(ks[8], ks[9], H1, NDIMS)     # fc4
    return (w1, b1, w21, b21, w22, b22, w3, b3, w4, b4)


def reference_forward(x, params, eps):
    """Pure-JAX f32 reference of the PyTorch forward."""
    (w1, b1, w21, b21, w22, b22, w3, b3, w4, b4) = params
    x2d = x.reshape(-1, NDIMS)
    h1 = jnp.maximum(x2d @ w1 + b1, 0.0)
    mu = h1 @ w21 + b21
    logvar = h1 @ w22 + b22
    z = mu + eps.reshape(-1, Z) * jnp.exp(0.5 * logvar)
    h3 = jnp.maximum(z @ w3 + b3, 0.0)
    recon = jax.nn.sigmoid(h3 @ w4 + b4)
    return recon, mu, logvar


if __name__ == "__main__":
    key = jax.random.PRNGKey(0)
    k_param, k_x, k_eps = jax.random.split(key, 3)

    params = init_params(k_param)

    # Small demo batch; the whole batch fits one grid step.
    B = 16
    x = jax.random.normal(k_x, (B, NDIMS), dtype=jnp.float32)
    # eps ~ randn_like(std): drawn outside the kernel for determinism.
    eps = jax.random.normal(k_eps, (B, Z), dtype=jnp.float32)

    r_ref, m_ref, lv_ref = reference_forward(x, params, eps)

    # 1) f32-MXU path: tight check against the pure-JAX reference.
    recon, mu, logvar = vae_forward(x, params, eps, mxu_dtype=jnp.float32)
    jax.block_until_ready((recon, mu, logvar))
    assert jnp.allclose(recon, r_ref, atol=1e-5), "recon mismatch (f32)"
    assert jnp.allclose(mu, m_ref, atol=1e-5), "mu mismatch (f32)"
    assert jnp.allclose(logvar, lv_ref, atol=1e-5), "logvar mismatch (f32)"

    # 2) Default bf16-MXU path (v6e/v7x): looser tolerance vs the f32 reference.
    recon_bf, mu_bf, logvar_bf = vae_forward(x, params, eps)
    jax.block_until_ready((recon_bf, mu_bf, logvar_bf))
    assert jnp.allclose(recon_bf, r_ref, atol=3e-2), "recon mismatch (bf16)"
    assert jnp.allclose(mu_bf, m_ref, atol=3e-2), "mu mismatch (bf16)"
    assert jnp.allclose(logvar_bf, lv_ref, atol=3e-2), "logvar mismatch (bf16)"

    # 3) Ragged batch (B not a multiple of the tile) exercises the padding path
    #    and a multi-step grid.
    B2 = 13
    x2 = jax.random.normal(k_x, (B2, NDIMS), dtype=jnp.float32)
    eps2 = jax.random.normal(k_eps, (B2, Z), dtype=jnp.float32)
    r2, m2, lv2 = vae_forward(x2, params, eps2, tile_b=8, mxu_dtype=jnp.float32)
    jax.block_until_ready((r2, m2, lv2))
    r2_ref, m2_ref, lv2_ref = reference_forward(x2, params, eps2)
    assert jnp.allclose(r2, r2_ref, atol=1e-5), "recon mismatch (ragged)"
    assert jnp.allclose(m2, m2_ref, atol=1e-5), "mu mismatch (ragged)"
    assert jnp.allclose(lv2, lv2_ref, atol=1e-5), "logvar mismatch (ragged)"

    print("KERNEL_OK")
</pallas_src>

<mosaic_0001>
module attributes {stable_mosaic.version = 11 : i64} {
  func.func @_vae_kernel(%arg0: i32, %arg1: memref<16x3xf32, #tpu.memory_space<vmem>>, %arg2: memref<3x128xf32, #tpu.memory_space<vmem>>, %arg3: memref<1x128xf32, #tpu.memory_space<vmem>>, %arg4: memref<128x32xf32, #tpu.memory_space<vmem>>, %arg5: memref<1x32xf32, #tpu.memory_space<vmem>>, %arg6: memref<16x128xf32, #tpu.memory_space<vmem>>, %arg7: memref<1x128xf32, #tpu.memory_space<vmem>>, %arg8: memref<128x3xf32, #tpu.memory_space<vmem>>, %arg9: memref<1x3xf32, #tpu.memory_space<vmem>>, %arg10: memref<16x16xf32, #tpu.memory_space<vmem>>, %arg11: memref<16x3xf32, #tpu.memory_space<vmem>>, %arg12: memref<16x32xf32, #tpu.memory_space<vmem>>) attributes {dimension_semantics = [#tpu.dimension_semantics<parallel>], iteration_bounds = array<i64: 1>, scalar_prefetch = 0 : i64, scratch_operands = 0 : i64, tpu.core_type = #tpu.core_type<tc>, window_params = [{transform_indices = @transform_0, window_bounds = array<i64: 16, 3>}, {pipeline_mode = #tpu.pipeline_mode<synchronous>, transform_indices = @transform_1, window_bounds = array<i64: 3, 128>}, {pipeline_mode = #tpu.pipeline_mode<synchronous>, transform_indices = @transform_2, window_bounds = array<i64: 1, 128>}, {pipeline_mode = #tpu.pipeline_mode<synchronous>, transform_indices = @transform_3, window_bounds = array<i64: 128, 32>}, {pipeline_mode = #tpu.pipeline_mode<synchronous>, transform_indices = @transform_4, window_bounds = array<i64: 1, 32>}, {pipeline_mode = #tpu.pipeline_mode<synchronous>, transform_indices = @transform_5, window_bounds = array<i64: 16, 128>}, {pipeline_mode = #tpu.pipeline_mode<synchronous>, transform_indices = @transform_6, window_bounds = array<i64: 1, 128>}, {pipeline_mode = #tpu.pipeline_mode<synchronous>, transform_indices = @transform_7, window_bounds = array<i64: 128, 3>}, {pipeline_mode = #tpu.pipeline_mode<synchronous>, transform_indices = @transform_8, window_bounds = array<i64: 1, 3>}, {transform_indices = @transform_9, window_bounds = array<i64: 16, 16>}, {transform_indices = @transform_10, window_bounds = array<i64: 16, 3>}, {transform_indices = @transform_11, window_bounds = array<i64: 16, 32>}]} {
    %c0 = arith.constant 0 : index
    %c0_0 = arith.constant 0 : index
    %0 = vector.load %arg1[%c0, %c0_0] : memref<16x3xf32, #tpu.memory_space<vmem>>, vector<16x3xf32>
    %c0_1 = arith.constant 0 : index
    %c0_2 = arith.constant 0 : index
    %1 = vector.load %arg2[%c0_1, %c0_2] : memref<3x128xf32, #tpu.memory_space<vmem>>, vector<3x128xf32>
    %2 = vector.extract_strided_slice %0 {offsets = [0, 0], sizes = [16, 1], strides = [1, 1]} : vector<16x3xf32> to vector<16x1xf32>
    %3 = vector.extract_strided_slice %1 {offsets = [0, 0], sizes = [1, 128], strides = [1, 1]} : vector<3x128xf32> to vector<1x128xf32>
    %4 = vector.broadcast %2 : vector<16x1xf32> to vector<16x128xf32>
    %5 = vector.broadcast %3 : vector<1x128xf32> to vector<16x128xf32>
    %6 = arith.mulf %4, %5 : vector<16x128xf32>
    %7 = vector.extract_strided_slice %0 {offsets = [0, 1], sizes = [16, 1], strides = [1, 1]} : vector<16x3xf32> to vector<16x1xf32>
    %8 = vector.extract_strided_slice %1 {offsets = [1, 0], sizes = [1, 128], strides = [1, 1]} : vector<3x128xf32> to vector<1x128xf32>
    %9 = vector.broadcast %7 : vector<16x1xf32> to vector<16x128xf32>
    %10 = vector.broadcast %8 : vector<1x128xf32> to vector<16x128xf32>
    %11 = arith.mulf %9, %10 : vector<16x128xf32>
    %12 = arith.addf %6, %11 : vector<16x128xf32>
    %13 = vector.extract_strided_slice %0 {offsets = [0, 2], sizes = [16, 1], strides = [1, 1]} : vector<16x3xf32> to vector<16x1xf32>
    %14 = vector.extract_strided_slice %1 {offsets = [2, 0], sizes = [1, 128], strides = [1, 1]} : vector<3x128xf32> to vector<1x128xf32>
    %15 = vector.broadcast %13 : vector<16x1xf32> to vector<16x128xf32>
    %16 = vector.broadcast %14 : vector<1x128xf32> to vector<16x128xf32>
    %17 = arith.mulf %15, %16 : vector<16x128xf32>
    %18 = arith.addf %12, %17 : vector<16x128xf32>
    %c0_3 = arith.constant 0 : index
    %c0_4 = arith.constant 0 : index
    %19 = vector.load %arg3[%c0_3, %c0_4] : memref<1x128xf32, #tpu.memory_space<vmem>>, vector<1x128xf32>
    %20 = vector.broadcast %19 : vector<1x128xf32> to vector<16x128xf32>
    %21 = arith.addf %18, %20 : vector<16x128xf32>
    %cst = arith.constant 0.000000e+00 : f32
    %22 = vector.broadcast %cst : f32 to vector<16x128xf32>
    %23 = arith.maximumf %21, %22 : vector<16x128xf32>
    %c0_5 = arith.constant 0 : index
    %c0_6 = arith.constant 0 : index
    %24 = vector.load %arg4[%c0_5, %c0_6] : memref<128x32xf32, #tpu.memory_space<vmem>>, vector<128x32xf32>
    %cst_7 = arith.constant dense<0.000000e+00> : vector<16x32xf32>
    %25 = tpu.matmul %23, %24, %cst_7 {dimension_numbers = #tpu.dot_dimension_numbers<[1], [0], [0], [1], [0, 0, 1, 1], [], []>} : vector<16x128xf32>, vector<128x32xf32>, vector<16x32xf32> -> vector<16x32xf32>
    %c0_8 = arith.constant 0 : index
    %c0_9 = arith.constant 0 : index
    %26 = vector.load %arg5[%c0_8, %c0_9] : memref<1x32xf32, #tpu.memory_space<vmem>>, vector<1x32xf32>
    %27 = vector.broadcast %26 : vector<1x32xf32> to vector<16x32xf32>
    %28 = arith.addf %25, %27 : vector<16x32xf32>
    %29 = vector.extract_strided_slice %28 {offsets = [0, 0], sizes = [16, 16], strides = [1, 1]} : vector<16x32xf32> to vector<16x16xf32>
    %30 = vector.extract_strided_slice %28 {offsets = [0, 16], sizes = [16, 16], strides = [1, 1]} : vector<16x32xf32> to vector<16x16xf32>
    %cst_10 = arith.constant 5.000000e-01 : f32
    %31 = vector.broadcast %cst_10 : f32 to vector<16x16xf32>
    %32 = arith.mulf %31, %30 : vector<16x16xf32>
    %33 = math.exp %32 : vector<16x16xf32>
    %c0_11 = arith.constant 0 : index
    %c0_12 = arith.constant 0 : index
    %34 = vector.load %arg10[%c0_11, %c0_12] : memref<16x16xf32, #tpu.memory_space<vmem>>, vector<16x16xf32>
    %35 = arith.mulf %34, %33 : vector<16x16xf32>
    %36 = arith.addf %29, %35 : vector<16x16xf32>
    %c0_13 = arith.constant 0 : index
    %c0_14 = arith.constant 0 : index
    %37 = vector.load %arg6[%c0_13, %c0_14] : memref<16x128xf32, #tpu.memory_space<vmem>>, vector<16x128xf32>
    %cst_15 = arith.constant dense<0.000000e+00> : vector<16x128xf32>
    %38 = tpu.matmul %36, %37, %cst_15 {dimension_numbers = #tpu.dot_dimension_numbers<[1], [0], [0], [1], [0, 0, 1, 1], [], []>} : vector<16x16xf32>, vector<16x128xf32>, vector<16x128xf32> -> vector<16x128xf32>
    %c0_16 = arith.constant 0 : index
    %c0_17 = arith.constant 0 : index
    %39 = vector.load %arg7[%c0_16, %c0_17] : memref<1x128xf32, #tpu.memory_space<vmem>>, vector<1x128xf32>
    %40 = vector.broadcast %39 : vector<1x128xf32> to vector<16x128xf32>
    %41 = arith.addf %38, %40 : vector<16x128xf32>
    %cst_18 = arith.constant 0.000000e+00 : f32
    %42 = vector.broadcast %cst_18 : f32 to vector<16x128xf32>
    %43 = arith.maximumf %41, %42 : vector<16x128xf32>
    %c0_19 = arith.constant 0 : index
    %c0_20 = arith.constant 0 : index
    %44 = vector.load %arg8[%c0_19, %c0_20] : memref<128x3xf32, #tpu.memory_space<vmem>>, vector<128x3xf32>
    %cst_21 = arith.constant dense<0.000000e+00> : vector<16x3xf32>
    %45 = tpu.matmul %43, %44, %cst_21 {dimension_numbers = #tpu.dot_dimension_numbers<[1], [0], [0], [1], [0, 0, 1, 1], [], []>} : vector<16x128xf32>, vector<128x3xf32>, vector<16x3xf32> -> vector<16x3xf32>
    %c0_22 = arith.constant 0 : index
    %c0_23 = arith.constant 0 : index
    %46 = vector.load %arg9[%c0_22, %c0_23] : memref<1x3xf32, #tpu.memory_space<vmem>>, vector<1x3xf32>
    %47 = vector.broadcast %46 : vector<1x3xf32> to vector<16x3xf32>
    %48 = arith.addf %45, %47 : vector<16x3xf32>
    %49 = arith.negf %48 : vector<16x3xf32>
    %50 = math.exp %49 : vector<16x3xf32>
    %cst_24 = arith.constant 1.000000e+00 : f32
    %51 = vector.broadcast %cst_24 : f32 to vector<16x3xf32>
    %52 = arith.addf %51, %50 : vector<16x3xf32>
    %53 = arith.divf %51, %52 : vector<16x3xf32>
    %c0_25 = arith.constant 0 : index
    %c0_26 = arith.constant 0 : index
    %54 = vector.load %arg11[%c0_25, %c0_26] : memref<16x3xf32, #tpu.memory_space<vmem>>, vector<16x3xf32>
    tpu.vector_store %arg11[%c0_25, %c0_26], %53 {strides = array<i32>} : memref<16x3xf32, #tpu.memory_space<vmem>>, vector<16x3xf32>,
    %c0_27 = arith.constant 0 : index
    %c0_28 = arith.constant 0 : index
    %55 = vector.load %arg12[%c0_27, %c0_28] : memref<16x32xf32, #tpu.memory_space<vmem>>, vector<16x32xf32>
    tpu.vector_store %arg12[%c0_27, %c0_28], %28 {strides = array<i32>} : memref<16x32xf32, #tpu.memory_space<vmem>>, vector<16x32xf32>,
    return
  }
  func.func @transform_0(%arg0: i32) -> (i32, i32) {
    %c0_i32 = arith.constant 0 : i32
    %c0_i32_0 = arith.constant 0 : i32
    return %arg0, %c0_i32 : i32, i32
  }
  func.func @transform_1(%arg0: i32) -> (i32, i32) {
    %c0_i32 = arith.constant 0 : i32
    %c0_i32_0 = arith.constant 0 : i32
    %c0_i32_1 = arith.constant 0 : i32
    return %c0_i32, %c0_i32_0 : i32, i32
  }
  func.func @transform_2(%arg0: i32) -> (i32, i32) {
    %c0_i32 = arith.constant 0 : i32
    %c0_i32_0 = arith.constant 0 : i32
    %c0_i32_1 = arith.constant 0 : i32
    return %c0_i32, %c0_i32_0 : i32, i32
  }
  func.func @transform_3(%arg0: i32) -> (i32, i32) {
    %c0_i32 = arith.constant 0 : i32
    %c0_i32_0 = arith.constant 0 : i32
    %c0_i32_1 = arith.constant 0 : i32
    return %c0_i32, %c0_i32_0 : i32, i32
  }
  func.func @transform_4(%arg0: i32) -> (i32, i32) {
    %c0_i32 = arith.constant 0 : i32
    %c0_i32_0 = arith.constant 0 : i32
    %c0_i32_1 = arith.constant 0 : i32
    return %c0_i32, %c0_i32_0 : i32, i32
  }
  func.func @transform_5(%arg0: i32) -> (i32, i32) {
    %c0_i32 = arith.constant 0 : i32
    %c0_i32_0 = arith.constant 0 : i32
    %c0_i32_1 = arith.constant 0 : i32
    return %c0_i32, %c0_i32_0 : i32, i32
  }
  func.func @transform_6(%arg0: i32) -> (i32, i32) {
    %c0_i32 = arith.constant 0 : i32
    %c0_i32_0 = arith.constant 0 : i32
    %c0_i32_1 = arith.constant 0 : i32
    return %c0_i32, %c0_i32_0 : i32, i32
  }
  func.func @transform_7(%arg0: i32) -> (i32, i32) {
    %c0_i32 = arith.constant 0 : i32
    %c0_i32_0 = arith.constant 0 : i32
    %c0_i32_1 = arith.constant 0 : i32
    return %c0_i32, %c0_i32_0 : i32, i32
  }
  func.func @transform_8(%arg0: i32) -> (i32, i32) {
    %c0_i32 = arith.constant 0 : i32
    %c0_i32_0 = arith.constant 0 : i32
    %c0_i32_1 = arith.constant 0 : i32
    return %c0_i32, %c0_i32_0 : i32, i32
  }
  func.func @transform_9(%arg0: i32) -> (i32, i32) {
    %c0_i32 = arith.constant 0 : i32
    %c0_i32_0 = arith.constant 0 : i32
    return %arg0, %c0_i32 : i32, i32
  }
  func.func @transform_10(%arg0: i32) -> (i32, i32) {
    %c0_i32 = arith.constant 0 : i32
    %c0_i32_0 = arith.constant 0 : i32
    return %arg0, %c0_i32 : i32, i32
  }
  func.func @transform_11(%arg0: i32) -> (i32, i32) {
    %c0_i32 = arith.constant 0 : i32
    %c0_i32_0 = arith.constant 0 : i32
    return %arg0, %c0_i32 : i32, i32
  }
}

</mosaic_0001>

<bundles_post_ra>
// kernel: tpu_custom_call.1
= control target key start
LH: loop header
LB: loop body
LE: loop exit
PB: predicated region body
PF: predicated region fallthrough
CT: control target
= control target key end

     0   :  { %v619_v3 = vmov 0   ;;  %s824_s0 = inlined_call_operand.vmem [shape: f32[16,3], index: 0, kind: input, shape index: {}]   ;;  %s825_s1 = inlined_call_operand.vmem [shape: f32[3,128], index: 1, kind: input, shape index: {}]   ;;  %s826_s2 = inlined_call_operand.vmem [shape: f32[1,128], index: 2, kind: input, shape index: {}]   ;;  %s827_s3 = inlined_call_operand.vmem [shape: f32[128,32], index: 3, kind: input, shape index: {}]   ;;  %s828_s4 = inlined_call_operand.vmem [shape: f32[1,32], index: 4, kind: input, shape index: {}]   ;;  %s829_s5 = inlined_call_operand.vmem [shape: f32[16,128], index: 5, kind: input, shape index: {}]   ;;  %s830_s6 = inlined_call_operand.vmem [shape: f32[1,128], index: 6, kind: input, shape index: {}]   ;;  %s831_s7 = inlined_call_operand.vmem [shape: f32[128,3], index: 7, kind: input, shape index: {}]   ;;  %s832_s8 = inlined_call_operand.vmem [shape: f32[1,3], index: 8, kind: input, shape index: {}]   ;;  %s833_s9 = inlined_call_operand.vmem [shape: f32[16,16], index: 9, kind: input, shape index: {}]   ;;  %s834_s10 = inlined_call_operand.vmem [shape: f32[16,3], index: 10, kind: output, shape index: {0}]   ;;  %s835_s11 = inlined_call_operand.hbm [shape: f32[16,32], index: 11, kind: output, shape index: {1}]  }
   0x1   :  { %v39_v0 = vld [vmem:[%s824_s0 + $0x8] sm:$0xff]  ;;  %v38_v1 = vld [vmem:[%s824_s0] sm:$0xff]  ;;  %v115_v2 = vld [vmem:[%s827_s3 + $0x78] sm:$0xff]  ;;  %581 = vset.pattern.permute.xlu1 %v619_v3  ;;  %579 = vset.pattern.permute.xlu0 %v619_v3 }
   0x2   :  { %48 = vperm.xlu1 %581, %v39_v0   ;;  %43 = vperm.xlu0 %579, %v38_v1   ;;  %v114_v4 = vld [vmem:[%s827_s3 + $0x70] sm:$0xff] }
   0x3   :  { %495 = vmatprep.subr.mxu0 %v115_v2 }
   0x4   :  { %496 = vmatpush3.msra.mxu0 %v115_v2 }
   0x5   :  { %497 = vmatprep.subr.mxu0 %v114_v4 }
   0x6   :  { %17 = vsyncpa [#allocation3], 0  ;;  %v620_v5 = vmov 1   ;;  %v113_v6 = vld [vmem:[%s827_s3 + $0x68] sm:$0xff]  ;;  %498 = vmatpush3.msra.mxu0 %v114_v4  ;;  %v112_v7 = vld [vmem:[%s827_s3 + $0x60] sm:$0xff]  ;;  %v621_v8 = vmov 2   ;;  %v51_v21 = vlaneseq }
   0x7   :  { %582 = vset.pattern.permute.xlu1 %v620_v5  ;;  %580 = vset.pattern.permute.xlu0 %v620_v5  ;;  %v111_v9 = vld [vmem:[%s827_s3 + $0x58] sm:$0xff]  ;;  %v110_v10 = vld [vmem:[%s827_s3 + $0x50] sm:$0xff]  ;;  %v109_v11 = vld [vmem:[%s827_s3 + $0x48] sm:$0xff]  ;;  %vm424_vm0 = vcmask 261120   ;;  %s622_s21 = smov 112   ;;  %vm227_vm1 = vcmask 130048  }
   0x8   :  { %62 = vperm.xlu1 %582, %v39_v0   ;;  %58 = vperm.xlu0 %580, %v38_v1   ;;  %v108_v12 = vld [vmem:[%s827_s3 + $0x40] sm:$0xff]  ;;  %v107_v13 = vld [vmem:[%s827_s3 + $0x38] sm:$0xff]  ;;  %v106_v14 = vld [vmem:[%s827_s3 + $0x30] sm:$0xff]  ;;  %v52_v22 = vshrl.u32 %v51_v21, 7  ;;  %s623_s29 = smov [#allocation2]  }
   0x9   :  { %499 = vmatprep.subr.mxu0 %v113_v6  ;;  %v105_v15 = vld [vmem:[%s827_s3 + $0x28] sm:$0xff]  ;;  %v104_v16 = vld [vmem:[%s827_s3 + $0x20] sm:$0xff]  ;;  %v103_v17 = vld [vmem:[%s827_s3 + $0x18] sm:$0xff]  ;;  %s434_s30 = sshll.u32 %s623_s29, 4  ;;  %s435_s30 = int_to_ptr.vmem [resolvable:$true] %s434_s30 }
   0xa   :  { %500 = vmatpush3.msra.mxu0 %v113_v6  ;;  %v102_v18 = vld [vmem:[%s827_s3 + $0x10] sm:$0xff]  ;;  %v101_v19 = vld [vmem:[%s827_s3 + $0x8] sm:$0xff]  ;;  %v100_v20 = vld [vmem:[%s827_s3] sm:$0xff]  ;;  %v67_v23 = vsub.s32 1, %v52_v22  ;;  %v53_v26 = vsub.s32 0, %v52_v22  ;;  %v83_v29 = vsub.s32 2, %v52_v22  ;;  %p602_p1 = scmp.lt.s32.totalorder %s435_s30, %s435_s30 }
   0xb   :  { %501 = vmatprep.subr.mxu0 %v112_v7  ;;  %v40_v27 = vld [vmem:[%s825_s1] sm:$0x7]  ;;  %v219_v60 = vld [vmem:[%s829_s5 + $0x8] sm:$0xff]  ;;  %v326_v62 = vld [vmem:[%s831_s7 + $0x78] sm:$0xff]  ;;  %s597_s12 = scalar_lea.vmem %s435_s30, 256 }
   0xc   :  { %583 = vset.pattern.permute.xlu1 %v621_v8  ;;  %584 = vset.pattern.permute.xlu0 %v621_v8  ;;  %v68_v28 = vrot.slane %v40_v27, %v67_v23  ;;  %v54_v30 = vrot.slane %v40_v27, %v53_v26  ;;  %v84_v35 = vrot.slane %v40_v27, %v83_v29  ;;  %v447_v44 = vld [vmem:[%s826_s2] ss:$0 sm:$0xff]  ;;  %v205_v4 = vld [vmem:[%s833_s9 + $0x8] sm:$0xff]  ;;  %v313_v21 = vld [vmem:[%s831_s7 + $0x10] sm:$0xff]  ;;  %p598_p0 = scmp.ne.s32.totalorder %s435_s30, %s597_s12  ;;  %p603_p2 = scmp.lt.s32.totalorder %s597_s12, %s597_s12 }
   0xd   :  { %74 = vperm.xlu1 %583, %v38_v1   ;;  %78 = vperm.xlu0 %584, %v39_v0   ;;  %v448_v51 = vld [vmem:[%s828_s4] ss:$0 sm:$0xff]  ;;  %v312_v22 = vld [vmem:[%s831_s7 + $0x8] sm:$0xff] }
   0xe   :  { %502 = vmatpush3.msra.mxu0 %v112_v7  ;;  %530 = vmatprep.subr.mxu1 %v219_v60  ;;  %v218_v61 = vld [vmem:[%s829_s5] sm:$0xff]  ;;  %p604_p3 = por %p603_p2, %p602_p1 }
   0xf   :  { %503 = vmatprep.subr.mxu0 %v111_v9  ;;  %531 = vmatpush3.msra.mxu1 %v219_v60  ;;  %v204_v1 = vld [vmem:[%s833_s9] sm:$0xff] }
  0x10   :  { %504 = vmatpush3.msra.mxu0 %v111_v9  ;;  %532 = vmatprep.subr.mxu1 %v218_v61  ;;  %v325_v9 = vld [vmem:[%s831_s7 + $0x70] sm:$0xff]  ;;  %v311_v23 = vld [vmem:[%s831_s7] sm:$0xff]  ;;  %p605_p4 = pnand %p604_p3, %p598_p0 }
  0x11   :  { %505 = vmatprep.subr.mxu0 %v110_v10  ;;  %533 = vmatpush3.msra.mxu1 %v218_v61 }
  0x12   :  { %506 = vmatpush3.msra.mxu0 %v110_v10  ;;  %537 = vmatprep.subr.mxu1 %v326_v62  ;;  %v324_v10 = vld [vmem:[%s831_s7 + $0x68] sm:$0xff] }
  0x13   :  { %507 = vmatprep.subr.mxu0 %v109_v11 }
  0x14   :  { %508 = vmatpush3.msra.mxu0 %v109_v11  ;;  %v323_v11 = vld [vmem:[%s831_s7 + $0x60] sm:$0xff] }
  0x15   :  { %509 = vmatprep.subr.mxu0 %v108_v12 }
  0x16   :  { %510 = vmatpush3.msra.mxu0 %v108_v12  ;;  %v322_v12 = vld [vmem:[%s831_s7 + $0x58] sm:$0xff] }
  0x17   :  { %511 = vmatprep.subr.mxu0 %v107_v13 }
  0x18   :  { %512 = vmatpush3.msra.mxu0 %v107_v13  ;;  %v321_v13 = vld [vmem:[%s831_s7 + $0x50] sm:$0xff] }
  0x19   :  { %513 = vmatprep.subr.mxu0 %v106_v14 }
  0x1a   :  { %514 = vmatpush3.msra.mxu0 %v106_v14  ;;  %v320_v14 = vld [vmem:[%s831_s7 + $0x48] sm:$0xff] }
  0x1b   :  { %515 = vmatprep.subr.mxu0 %v105_v15 }
  0x1c   :  { %516 = vmatpush3.msra.mxu0 %v105_v15  ;;  %v319_v15 = vld [vmem:[%s831_s7 + $0x40] sm:$0xff] }
  0x1d   :  { %517 = vmatprep.subr.mxu0 %v104_v16 }
  0x1e   :  { %518 = vmatpush3.msra.mxu0 %v104_v16  ;;  %v318_v16 = vld [vmem:[%s831_s7 + $0x38] sm:$0xff] }
  0x1f   :  { %519 = vmatprep.subr.mxu0 %v103_v17 }
  0x20   :  { %520 = vmatpush3.msra.mxu0 %v103_v17  ;;  %v317_v17 = vld [vmem:[%s831_s7 + $0x30] sm:$0xff] }
  0x21   :  { %521 = vmatprep.subr.mxu0 %v102_v18 }
  0x22   :  { %522 = vmatpush3.msra.mxu0 %v102_v18  ;;  %v316_v18 = vld [vmem:[%s831_s7 + $0x28] sm:$0xff] }
  0x23   :  { %523 = vmatprep.subr.mxu0 %v101_v19 }
  0x24   :  { %524 = vmatpush3.msra.mxu0 %v101_v19  ;;  %v315_v19 = vld [vmem:[%s831_s7 + $0x20] sm:$0xff] }
  0x25   :  { %525 = vmatprep.subr.mxu0 %v100_v20 }
  0x26   :  { %526 = vmatpush3.msra.mxu0 %v100_v20  ;;  %v314_v20 = vld [vmem:[%s831_s7 + $0x18] sm:$0xff] }
  0x7d   :  { %v49_v24 = vpop.permute.xlu1 %48  ;;  %v44_v25 = vpop.permute.xlu0 %43 }
  0x7e   :  { %v56_v36 = vmul.f32 %v54_v30, %v49_v24  ;;  %v55_v37 = vmul.f32 %v54_v30, %v44_v25  ;;  %v449_v24 = vld [vmem:[%s830_s6] ss:$0 sm:$0xff] }
  0x83   :  { %v63_v31 = vpop.permute.xlu1 %62  ;;  %v59_v32 = vpop.permute.xlu0 %58 }
  0x84   :  { %v70_v33 = vmul.f32 %v68_v28, %v63_v31  ;;  %v69_v34 = vmul.f32 %v68_v28, %v59_v32 }
  0x86   :  { %v72_v40 = vadd.f32 %v70_v33, %v56_v36  ;;  %v71_v41 = vadd.f32 %v69_v34, %v55_v37 }
  0x88   :  { %v75_v38 = vpop.permute.xlu1 %74  ;;  %v79_v39 = vpop.permute.xlu0 %78 }
  0x89   :  { %v85_v42 = vmul.f32 %v84_v35, %v75_v38  ;;  %v86_v43 = vmul.f32 %v84_v35, %v79_v39 }
  0x8b   :  { %v88_v45 = vadd.f32 %v86_v43, %v72_v40  ;;  %v87_v46 = vadd.f32 %v85_v42, %v71_v41 }
  0x8d   :  { %v96_v47 = vadd.f32 %v447_v44, %v87_v46  ;;  %v97_v48 = vadd.f32 %v447_v44, %v88_v45 }
  0x8f   :  { %v98_v49 = vmax.f32 %v96_v47, 0.0  ;;  %v99_v50 = vmax.f32 %v97_v48, 0.0 }
  0x91   :  { %527 = vmatprep.mubr.f32.mxu0 %v98_v49 }
  0x92   :  { %528 = vmatmul.mubr.f32.vlgmr.msra.gmra.mxu0 %v99_v50 }
 0x152   :  { %v529_v52 = vpop.f32.mrf.mxu0 }
 0x153   :  { %v195_v53 = vadd.f32 %v529_v52, %v448_v51 }
 0x154   :  { %v189_v54 = vpop.f32.mrf.mxu0 }
 0x155   :  { %426 = vst.msk [vmem:[#allocation2 + $0x8] sm:$0xff] %vm424_vm0, %v195_v53  ;;  %v190_v55 = vadd.f32 %v448_v51, %v189_v54  ;;  %v199_v56 = vmul.f32 0.5, %v195_v53 }
 0x157   :  { %v198_v57 = vmul.f32 0.5, %v190_v55  ;;  %425 = vst.msk [vmem:[#allocation2] sm:$0xff] %vm424_vm0, %v190_v55  ;;  %v202_v59 = vmul.f32 1.442695, %v199_v56 }
 0x159   :  { %v200_v58 = vmul.f32 1.442695, %v198_v57 }
 0x15b   :  { %585 = vpow2.f32 %v200_v58 }
 0x15c   :  { %587 = vpow2.f32 %v202_v59 }
 0x168   :  { %v586_v63 = vpop.eup %585 }
 0x169   :  { %208 = vrot.lane.b32.xlu1 %v586_v63, %s622_s21  ;;  %v588_v0 = vpop.eup %587 }
 0x16d   :  { %210 = vrot.lane.b32.xlu1 %v588_v0, %s622_s21 }
 0x1db   :  { %v209_v2 = vpop.permute.xlu1 %208 }
 0x1dc   :  { %v214_v3 = vmul.f32 %v209_v2, %v204_v1 }
 0x1de   :  { %v216_v5 = vadd.f32 %v214_v3, %v190_v55 }
 0x1df   :  { %v211_v6 = vpop.permute.xlu1 %210 }
 0x1e0   :  { %v215_v7 = vmul.f32 %v211_v6, %v205_v4  ;;  %534 = vmatprep.mubr.msk.f32.mxu1 %vm227_vm1, %v216_v5 }
 0x1e2   :  { %v217_v8 = vadd.f32 %v215_v7, %v195_v53 }
 0x1e4   :  { %535 = vmatmul.mubr.msk.f32.vlgmr.msra.gmra.mxu1 %vm227_vm1, %v217_v8 }
 0x1e5   :  { %538 = vmatpush3.msra.mxu1 %v326_v62 }
 0x1e6   :  { %539 = vmatprep.subr.mxu1 %v325_v9 }
 0x1e7   :  { %540 = vmatpush3.msra.mxu1 %v325_v9 }
 0x1e8   :  { %541 = vmatprep.subr.mxu1 %v324_v10 }
 0x1e9   :  { %542 = vmatpush3.msra.mxu1 %v324_v10 }
 0x1ea   :  { %543 = vmatprep.subr.mxu1 %v323_v11 }
 0x1eb   :  { %544 = vmatpush3.msra.mxu1 %v323_v11 }
 0x1ec   :  { %545 = vmatprep.subr.mxu1 %v322_v12 }
 0x1ed   :  { %546 = vmatpush3.msra.mxu1 %v322_v12 }
 0x1ee   :  { %547 = vmatprep.subr.mxu1 %v321_v13 }
 0x1ef   :  { %548 = vmatpush3.msra.mxu1 %v321_v13 }
 0x1f0   :  { %549 = vmatprep.subr.mxu1 %v320_v14 }
 0x1f1   :  { %550 = vmatpush3.msra.mxu1 %v320_v14 }
 0x1f2   :  { %551 = vmatprep.subr.mxu1 %v319_v15 }
 0x1f3   :  { %552 = vmatpush3.msra.mxu1 %v319_v15 }
 0x1f4   :  { %553 = vmatprep.subr.mxu1 %v318_v16 }
 0x1f5   :  { %554 = vmatpush3.msra.mxu1 %v318_v16 }
 0x1f6   :  { %555 = vmatprep.subr.mxu1 %v317_v17 }
 0x1f7   :  { %556 = vmatpush3.msra.mxu1 %v317_v17 }
 0x1f8   :  { %557 = vmatprep.subr.mxu1 %v316_v18 }
 0x1f9   :  { %558 = vmatpush3.msra.mxu1 %v316_v18 }
 0x1fa   :  { %559 = vmatprep.subr.mxu1 %v315_v19 }
 0x1fb   :  { %560 = vmatpush3.msra.mxu1 %v315_v19 }
 0x1fc   :  { %561 = vmatprep.subr.mxu1 %v314_v20 }
 0x1fd   :  { %562 = vmatpush3.msra.mxu1 %v314_v20 }
 0x1fe   :  { %563 = vmatprep.subr.mxu1 %v313_v21 }
 0x1ff   :  { %564 = vmatpush3.msra.mxu1 %v313_v21 }
 0x200   :  { %565 = vmatprep.subr.mxu1 %v312_v22 }
 0x201   :  { %566 = vmatpush3.msra.mxu1 %v312_v22 }
 0x202   :  { %567 = vmatprep.subr.mxu1 %v311_v23 }
 0x203   :  { %568 = vmatpush3.msra.mxu1 %v311_v23 }
 0x2a4   :  { %v536_v25 = vpop.f32.mrf.mxu1 }
 0x2a5   :  { %v306_v26 = vadd.f32 %v536_v25, %v449_v24 }
 0x2a6   :  { %v300_v27 = vpop.f32.mrf.mxu1 }
 0x2a7   :  { %v301_v28 = vadd.f32 %v449_v24, %v300_v27  ;;  %v310_v30 = vmax.f32 %v306_v26, 0.0 }
 0x2a9   :  { %v309_v29 = vmax.f32 %v301_v28, 0.0 }
 0x2ab   :  { %569 = vmatprep.mubr.f32.mxu1 %v309_v29 }
 0x2ac   :  { %570 = vmatmul.mubr.f32.vlgmr.msra.gmra.mxu1 %v310_v30 }
 0x2ad   :  { %608 = shalt.err (!%p605_p4)
}
 0x2ae   :  { %s624_s7 = smov 128   ;;  %s625_s6 = smov 8   ;;  %v452_v31 = vld [vmem:[%s832_s8] ss:$0 sm:$0xff]  ;;  %vm421_vm2 = vcmask 23552  }
 0x2af   :  { %440 = dma.vmem_to_hbm [thread:$0]  %s435_s30, 256, %s835_s11, [#allocation3], %s624_s7, %s624_s7, %s625_s6  }
 0x36c   :  { %v571_v32 = vpop.f32.mrf.mxu1 }
 0x36d   :  { %v406_v33 = vadd.f32 %v571_v32, %v452_v31 }
 0x36e   :  { %v400_v34 = vpop.f32.mrf.mxu1 }
 0x36f   :  { %v454_v35 = vmul.f32 -1.442695, %v406_v33  ;;  %v401_v36 = vadd.f32 %v452_v31, %v400_v34 }
 0x371   :  { %589 = vpow2.f32 %v454_v35  ;;  %v453_v37 = vmul.f32 -1.442695, %v401_v36 }
 0x373   :  { %591 = vpow2.f32 %v453_v37 }
 0x37e   :  { %v590_v38 = vpop.eup %589 }
 0x37f   :  { %v416_v39 = vadd.f32 1.0, %v590_v38 }
 0x380   :  { %v592_v40 = vpop.eup %591 }
 0x381   :  { %593 = vrcp.f32 %v416_v39  ;;  %v415_v41 = vadd.f32 1.0, %v592_v40 }
 0x383   :  { %595 = vrcp.f32 %v415_v41 }
 0x38e   :  { %v594_v42 = vpop.eup %593 }
 0x38f   :  { %423 = vst.msk [vmem:[%s834_s10 + $0x8] sm:$0xff] %vm421_vm2, %v594_v42 }
 0x390   :  { %v596_v43 = vpop.eup %595 }
 0x391   :  { %422 = vst.msk [vmem:[%s834_s10] sm:$0xff] %vm421_vm2, %v596_v43 }
 0x392   :  { %617 = dma.done.wait [#allocation3], 256  }
 0x393   :  { %618 = vsyncadd [#allocation3], 4294967040 }
 0x394   :  { %446 = vsyncpa [#allocation3], 1 }

</bundles_post_ra>
